<compile_context>
chip_gen: v7x
topology: tpu7x:2x2x1
jax: 0.10.0
libtpu: 0.0.40
codegen_flags: <defaults>
</compile_context>

<pallas_src>
import functools

import jax
import jax.numpy as jnp
from jax.experimental import pallas as pl
from jax.experimental.pallas import tpu as pltpu

GAMMA = 2.0
LANES = 128           # lane width
SUBLANES = 8          # f32 sublanes per vreg
MAX_ROW_TILE = 1024   # 1024*128*4 B = 512 KiB per f32 input block (~85% roofline)
NSPLIT = 2            # leading "parallel" grid axis (v7x has 2 TensorCores)


def _round_up(a, m):
    return ((a + m - 1) // m) * m


def _sublane_mult(dtype):
    """Row granularity per packed sublane tier: 8 (32-bit), 16 (16-bit), 32 (8-bit)."""
    return max(SUBLANES, 32 // jnp.dtype(dtype).itemsize)


def _focal_bce(x, t, gamma, *, in_kernel):
    """Per-element focal-BCE (x, t already float32). Shared by kernel and XLA tail."""
    e = jnp.exp(-jnp.abs(x))                       # shared transcendental
    sp = jnp.log1p(e)                              # softplus(-|x|)
    log_sig = jnp.minimum(x, 0.0) - sp             # logsigmoid(x)
    num = jnp.where(x >= 0, e, 1.0)
    if in_kernel:
        # sigmoid(-x) = where(x>=0, e, 1) / (1 + e); approx recip runs on the EUP.
        one_m_sig = num * pl.reciprocal(1.0 + e, approx=True)
    else:
        one_m_sig = num / (1.0 + e)
    if gamma == 2:
        w = one_m_sig * one_m_sig                  # explicit square, no pow -> exp(log)
    else:
        w = jnp.power(one_m_sig, jnp.float32(gamma))
    z = w * log_sig                                # z <= 0 always (w >= 0, log_sig <= 0)
    # BCEWithLogits(z, t) given z <= 0: max(z,0)=0 and |z| = -z.
    return jnp.log1p(jnp.exp(z)) - z * t


def _focal_loss_sum_kernel(x_ref, t_ref, out_ref, *, gamma, rows_total,
                           row_tile, steps_per_split, ragged):
    c = pl.program_id(0)   # "parallel" split (separate TensorCore on v7x)
    i = pl.program_id(1)   # "arbitrary" reduction step within the split

    @pl.when(i == 0)
    def _():
        out_ref[...] = jnp.zeros_like(out_ref)

    x = x_ref[...].astype(jnp.float32)
    t = t_ref[...].astype(jnp.float32)
    bce = _focal_bce(x, t, gamma, in_kernel=True)

    def _accum(vals):
        # Fold (row_tile, 128) -> (8, 128) with plain vector adds; the single
        # cross-lane reduce happens on the tiny output in the XLA wrapper.
        if row_tile > SUBLANES:
            vals = vals.reshape(row_tile // SUBLANES, SUBLANES, LANES).sum(axis=0)
        out_ref[...] += vals

    if not ragged:
        # Compile-time guarantee: every block is fully in range -> no mask ops.
        _accum(bce)
    else:
        b = c * steps_per_split + i                   # global block index
        is_full = (b + 1) * row_tile <= rows_total    # scalar predicate

        @pl.when(is_full)                             # interior blocks: no mask work
        def _():
            _accum(bce)

        @pl.when(jnp.logical_not(is_full))            # edge / redundant blocks only
        def _():
            valid = rows_total - b * row_tile         # may be <= 0 (redundant block)
            row = jax.lax.broadcasted_iota(jnp.int32, bce.shape, 0)
            _accum(jnp.where(row < valid, bce, 0.0))


def focal_loss(x, target, gamma=GAMMA):
    """x, target: same shape (any); returns scalar mean focal-BCE loss."""
    n = x.size
    x_flat = x.reshape(-1)
    t_flat = target.reshape(-1)

    rows_total = n // LANES
    n_main = rows_total * LANES

    total = jnp.zeros((), jnp.float32)

    if rows_total > 0:
        mult = max(_sublane_mult(x.dtype), _sublane_mult(target.dtype))
        row_tile = min(MAX_ROW_TILE, _round_up(rows_total, mult))
        total_steps = pl.cdiv(rows_total, row_tile)
        nsplit = NSPLIT if total_steps >= NSPLIT else 1
        steps_per_split = pl.cdiv(total_steps, nsplit)
        # Edge/redundant blocks exist iff the tile doesn't divide the rows or
        # the split count doesn't divide the step count.
        ragged = (total_steps * row_tile != rows_total
                  or nsplit * steps_per_split != total_steps)

        # Zero-copy reshape when n is lane-aligned; otherwise only the aligned
        # prefix is materialized (no full-array jnp.pad copy).
        if n_main == n:
            x2 = x_flat.reshape(rows_total, LANES)
            t2 = t_flat.reshape(rows_total, LANES)
        else:
            x2 = x_flat[:n_main].reshape(rows_total, LANES)
            t2 = t_flat[:n_main].reshape(rows_total, LANES)

        last_block = total_steps - 1

        def in_map(c, i):
            # Clamp so any redundant block of the last split stays in bounds;
            # its contribution is masked to zero inside the kernel.
            return (jnp.minimum(c * steps_per_split + i, last_block), 0)

        kernel = functools.partial(
            _focal_loss_sum_kernel, gamma=gamma, rows_total=rows_total,
            row_tile=row_tile, steps_per_split=steps_per_split, ragged=ragged)

        partial = pl.pallas_call(
            kernel,
            out_shape=jax.ShapeDtypeStruct((nsplit * SUBLANES, LANES), jnp.float32),
            grid_spec=pltpu.PrefetchScalarGridSpec(
                num_scalar_prefetch=0,
                grid=(nsplit, steps_per_split),
                in_specs=[
                    pl.BlockSpec((row_tile, LANES), in_map),
                    pl.BlockSpec((row_tile, LANES), in_map),
                ],
                # Lane-dense per-split accumulator: resident across the inner
                # ("arbitrary") axis, disjoint per "parallel" split.
                out_specs=pl.BlockSpec((SUBLANES, LANES), lambda c, i: (c, 0)),
            ),
            compiler_params=pltpu.CompilerParams(
                dimension_semantics=("parallel", "arbitrary")),
        )(x2, t2)
        total = total + jnp.sum(partial)

    if n_main != n:
        # <128-element ragged tail: negligible work, done in plain XLA.
        total = total + jnp.sum(
            _focal_bce(x_flat[n_main:].astype(jnp.float32),
                       t_flat[n_main:].astype(jnp.float32),
                       gamma, in_kernel=False))

    # TODO(synk): for >2^31 elements use a wider accumulator / f64 divide.
    return total / jnp.float32(n)


def _focal_loss_ref(x, target, gamma=GAMMA):
    x = x.astype(jnp.float32)
    t = target.astype(jnp.float32)
    z = jnp.power(1.0 - jax.nn.sigmoid(x), gamma) * jax.nn.log_sigmoid(x)
    bce = jnp.maximum(z, 0.0) - z * t + jnp.log1p(jnp.exp(-jnp.abs(z)))
    return jnp.mean(bce)


if __name__ == "__main__":
    loss_fn = jax.jit(focal_loss)

    key = jax.random.PRNGKey(0)
    k1, k2, k3, k4, k5, k6 = jax.random.split(key, 6)

    # 1) Natural NCHW use-case: lane-aligned, single full block.
    x = jax.random.normal(k1, (2, 4, 16, 16), dtype=jnp.float32)
    t = (jax.random.uniform(k2, (2, 4, 16, 16)) > 0.5).astype(jnp.float32)
    loss = jax.block_until_ready(loss_fn(x, t))
    ref = _focal_loss_ref(x, t)
    assert jnp.allclose(loss, ref, rtol=5e-3, atol=1e-6), (loss, ref)

    # 2) Awkward shape: non-lane-aligned total (XLA tail) + partial edge block.
    x_odd = jax.random.normal(k3, (3, 5, 7, 11), dtype=jnp.float32)
    t_odd = (jax.random.uniform(k4, (3, 5, 7, 11)) > 0.5).astype(jnp.float32)
    loss_odd = jax.block_until_ready(loss_fn(x_odd, t_odd))
    ref_odd = _focal_loss_ref(x_odd, t_odd)
    assert jnp.allclose(loss_odd, ref_odd, rtol=5e-3, atol=1e-6), (loss_odd, ref_odd)

    # 3) bf16 inputs spanning two tiles: exercises the 2-way split + row masking.
    x_bf = jax.random.normal(k5, (4, 8, 48, 128), dtype=jnp.float32).astype(jnp.bfloat16)
    t_bf = (jax.random.uniform(k6, (4, 8, 48, 128)) > 0.5).astype(jnp.bfloat16)
    loss_bf = jax.block_until_ready(loss_fn(x_bf, t_bf))
    ref_bf = _focal_loss_ref(x_bf, t_bf)
    assert jnp.allclose(loss_bf, ref_bf, rtol=5e-3, atol=1e-6), (loss_bf, ref_bf)

    print("KERNEL_OK")
</pallas_src>

<mosaic_0001>
module attributes {stable_mosaic.version = 11 : i64} {
  func.func @_focal_loss_sum_kernel(%arg0: i32, %arg1: i32, %arg2: memref<16x128xf32, #tpu.memory_space<vmem>>, %arg3: memref<16x128xf32, #tpu.memory_space<vmem>>, %arg4: memref<8x128xf32, #tpu.memory_space<vmem>>) attributes {dimension_semantics = [#tpu.dimension_semantics<parallel>, #tpu.dimension_semantics<arbitrary>], iteration_bounds = array<i64: 1, 1>, scalar_prefetch = 0 : i64, scratch_operands = 0 : i64, tpu.core_type = #tpu.core_type<tc>, window_params = [{transform_indices = @transform_0, window_bounds = array<i64: 16, 128>}, {transform_indices = @transform_1, window_bounds = array<i64: 16, 128>}, {transform_indices = @transform_2, window_bounds = array<i64: 8, 128>}]} {
    %c0_i32 = arith.constant 0 : i32
    %0 = arith.cmpi eq, %arg1, %c0_i32 : i32
    %1 = arith.extui %0 : i1 to i32
    %c0_i32_0 = arith.constant 0 : i32
    %2 = arith.cmpi ne, %1, %c0_i32_0 : i32
    scf.if %2 {
      %cst_13 = arith.constant 0.000000e+00 : f32
      %32 = vector.broadcast %cst_13 : f32 to vector<8x128xf32>
      %c0_14 = arith.constant 0 : index
      %c0_15 = arith.constant 0 : index
      %33 = vector.load %arg4[%c0_14, %c0_15] : memref<8x128xf32, #tpu.memory_space<vmem>>, vector<8x128xf32>
      tpu.vector_store %arg4[%c0_14, %c0_15], %32 {strides = array<i32>} : memref<8x128xf32, #tpu.memory_space<vmem>>, vector<8x128xf32>,
    } else {
    }
    %c0 = arith.constant 0 : index
    %c0_1 = arith.constant 0 : index
    %3 = vector.load %arg2[%c0, %c0_1] : memref<16x128xf32, #tpu.memory_space<vmem>>, vector<16x128xf32>
    %c0_2 = arith.constant 0 : index
    %c0_3 = arith.constant 0 : index
    %4 = vector.load %arg3[%c0_2, %c0_3] : memref<16x128xf32, #tpu.memory_space<vmem>>, vector<16x128xf32>
    %5 = math.absf %3 : vector<16x128xf32>
    %cst = arith.constant 0.000000e+00 : f32
    %6 = vector.broadcast %cst : f32 to vector<16x128xf32>
    %7 = arith.subf %6, %5 : vector<16x128xf32>
    %8 = math.exp %7 : vector<16x128xf32>
    %9 = math.log1p %8 : vector<16x128xf32>
    %cst_4 = arith.constant 0.000000e+00 : f32
    %10 = vector.broadcast %cst_4 : f32 to vector<16x128xf32>
    %11 = arith.minimumf %3, %10 : vector<16x128xf32>
    %12 = arith.subf %11, %9 : vector<16x128xf32>
    %cst_5 = arith.constant 0.000000e+00 : f32
    %13 = vector.broadcast %cst_5 : f32 to vector<16x128xf32>
    %14 = arith.cmpf oge, %3, %13 : vector<16x128xf32>
    %cst_6 = arith.constant 1.000000e+00 : f32
    %15 = vector.broadcast %cst_6 : f32 to vector<16x128xf32>
    %16 = arith.select %14, %8, %15 : vector<16x128xi1>, vector<16x128xf32>
    %cst_7 = arith.constant 1.000000e+00 : f32
    %17 = vector.broadcast %cst_7 : f32 to vector<16x128xf32>
    %18 = arith.addf %17, %8 : vector<16x128xf32>
    %19 = tpu.reciprocal %18 {approx = true} : vector<16x128xf32> -> vector<16x128xf32>
    %20 = arith.mulf %16, %19 : vector<16x128xf32>
    %21 = arith.mulf %20, %20 : vector<16x128xf32>
    %22 = arith.mulf %21, %12 : vector<16x128xf32>
    %23 = math.exp %22 : vector<16x128xf32>
    %24 = math.log1p %23 : vector<16x128xf32>
    %25 = arith.mulf %22, %4 : vector<16x128xf32>
    %26 = arith.subf %24, %25 : vector<16x128xf32>
    %27 = vector.shape_cast %26 : vector<16x128xf32> to vector<2x8x128xf32>
    %cst_8 = arith.constant dense<0.000000e+00> : vector<8x128xf32>
    %28 = vector.multi_reduction <add>, %27, %cst_8 [0] : vector<2x8x128xf32> to vector<8x128xf32>
    %c0_9 = arith.constant 0 : index
    %c0_10 = arith.constant 0 : index
    %29 = vector.load %arg4[%c0_9, %c0_10] : memref<8x128xf32, #tpu.memory_space<vmem>>, vector<8x128xf32>
    %30 = arith.addf %29, %28 : vector<8x128xf32>
    %c0_11 = arith.constant 0 : index
    %c0_12 = arith.constant 0 : index
    %31 = vector.load %arg4[%c0_11, %c0_12] : memref<8x128xf32, #tpu.memory_space<vmem>>, vector<8x128xf32>
    tpu.vector_store %arg4[%c0_11, %c0_12], %30 {strides = array<i32>} : memref<8x128xf32, #tpu.memory_space<vmem>>, vector<8x128xf32>,
    return
  }
  func.func @transform_0(%arg0: i32, %arg1: i32) -> (i32, i32) {
    %c1_i32 = arith.constant 1 : i32
    %0 = arith.muli %arg0, %c1_i32 : i32
    %1 = arith.addi %0, %arg1 : i32
    %c0_i32 = arith.constant 0 : i32
    %2 = arith.minsi %1, %c0_i32 : i32
    %c0_i32_0 = arith.constant 0 : i32
    %c0_i32_1 = arith.constant 0 : i32
    return %2, %c0_i32_0 : i32, i32
  }
  func.func @transform_1(%arg0: i32, %arg1: i32) -> (i32, i32) {
    %c1_i32 = arith.constant 1 : i32
    %0 = arith.muli %arg0, %c1_i32 : i32
    %1 = arith.addi %0, %arg1 : i32
    %c0_i32 = arith.constant 0 : i32
    %2 = arith.minsi %1, %c0_i32 : i32
    %c0_i32_0 = arith.constant 0 : i32
    %c0_i32_1 = arith.constant 0 : i32
    return %2, %c0_i32_0 : i32, i32
  }
  func.func @transform_2(%arg0: i32, %arg1: i32) -> (i32, i32) {
    %c0_i32 = arith.constant 0 : i32
    %c0_i32_0 = arith.constant 0 : i32
    return %arg0, %c0_i32 : i32, i32
  }
}

</mosaic_0001>

<bundles_post_ra>
// kernel: focal_loss.1
= control target key start
LH: loop header
LB: loop body
LE: loop exit
PB: predicated region body
PF: predicated region fallthrough
CT: control target
= control target key end

     0   :  { %s225_s0 = inlined_call_operand.vmem [shape: f32[16,128], index: 0, kind: input, shape index: {}]   ;;  %s226_s1 = inlined_call_operand.vmem [shape: f32[16,128], index: 1, kind: input, shape index: {}]   ;;  %s227_s2 = inlined_call_operand.vmem [shape: f32[8,128], index: 2, kind: output, shape index: {}]  }
   0x1   :  { %v80_v0 = vld [vmem:[%s225_s0] sm:$0xff]  ;;  %v81_v1 = vld [vmem:[%s225_s0 + $0x8] sm:$0xff] }
   0x2   :  { %v84_v2 = vand.u32 2147483647, %v80_v0  ;;  %v85_v3 = vand.u32 2147483647, %v81_v1  ;;  %vm114_vm0 = vcmp.ge.f32.partialorder %v80_v0, 0.0  ;;  %vm115_vm1 = vcmp.ge.f32.partialorder %v81_v1, 0.0 }
   0x3   :  { %v110_v21 = vmin.f32 %v80_v0, 0.0  ;;  %v111_v25 = vmin.f32 %v81_v1, 0.0  ;;  %v82_v51 = vld [vmem:[%s226_s1] sm:$0xff]  ;;  %v83_v53 = vld [vmem:[%s226_s1 + $0x8] sm:$0xff] }
   0x4   :  { %v86_v4 = vsub.f32 0.0, %v84_v2  ;;  %v87_v5 = vsub.f32 0.0, %v85_v3 }
   0x6   :  { %v88_v6 = vmul.f32 1.442695, %v86_v4  ;;  %v90_v7 = vmul.f32 1.442695, %v87_v5 }
   0x8   :  { %175 = vpow2.f32 %v88_v6 }
   0x9   :  { %177 = vpow2.f32 %v90_v7 }
  0x12   :  { %v176_v8 = vpop.eup %175 }
  0x13   :  { %v178_v9 = vpop.eup %177  ;;  %v92_v10 = vadd.f32 1.0, %v176_v8  ;;  %v95_v12 = vmul.f32 -0.5, %v176_v8  ;;  %v98_v15 = vand.u32 2147483647, %v176_v8  ;;  %v116_v22 = vsel %vm114_vm0, %v176_v8, 1.0 }
  0x14   :  { %v101_v11 = vadd.f32 1.0, %v178_v9  ;;  %v104_v13 = vmul.f32 -0.5, %v178_v9  ;;  %v107_v17 = vand.u32 2147483647, %v178_v9  ;;  %v117_v26 = vsel %vm115_vm1, %v178_v9, 1.0 }
  0x15   :  { %179 = vlog2.f32 %v92_v10  ;;  %v96_v14 = vadd.f32 1.0, %v95_v12  ;;  %vm99_vm2 = vcmp.lt.f32.partialorder %v98_v15, 0.0004427343 }
  0x16   :  { %181 = vlog2.f32 %v101_v11  ;;  %v105_v16 = vadd.f32 1.0, %v104_v13  ;;  %vm108_vm3 = vcmp.lt.f32.partialorder %v107_v17, 0.0004427343 }
  0x17   :  { %183 = vrcp.f32 %v92_v10  ;;  %v97_v18 = vmul.f32 %v176_v8, %v96_v14 }
  0x18   :  { %185 = vrcp.f32 %v101_v11  ;;  %v106_v20 = vmul.f32 %v178_v9, %v105_v16 }
  0x1f   :  { %v180_v19 = vpop.eup %179 }
  0x20   :  { %v182_v23 = vpop.eup %181  ;;  %v94_v24 = vmul.f32 0.6931472, %v180_v19 }
  0x21   :  { %v184_v27 = vpop.eup %183  ;;  %v103_v28 = vmul.f32 0.6931472, %v182_v23 }
  0x22   :  { %v186_v29 = vpop.eup %185  ;;  %v100_v30 = vsel %vm99_vm2, %v97_v18, %v94_v24  ;;  %v122_v31 = vmul.f32 %v184_v27, %v116_v22 }
  0x23   :  { %v109_v32 = vsel %vm108_vm3, %v106_v20, %v103_v28  ;;  %v112_v33 = vsub.f32 %v110_v21, %v100_v30  ;;  %v123_v34 = vmul.f32 %v186_v29, %v117_v26 }
  0x24   :  { %v113_v35 = vsub.f32 %v111_v25, %v109_v32  ;;  %v124_v36 = vmul.f32 %v122_v31, %v122_v31 }
  0x25   :  { %v125_v37 = vmul.f32 %v123_v34, %v123_v34 }
  0x26   :  { %v126_v38 = vmul.f32 %v124_v36, %v112_v33 }
  0x27   :  { %v127_v39 = vmul.f32 %v125_v37, %v113_v35 }
  0x28   :  { %v128_v40 = vmul.f32 1.442695, %v126_v38  ;;  %v150_v57 = vmul.f32 %v126_v38, %v82_v51 }
  0x29   :  { %v130_v41 = vmul.f32 1.442695, %v127_v39  ;;  %v151_v60 = vmul.f32 %v127_v39, %v83_v53 }
  0x2a   :  { %187 = vpow2.f32 %v128_v40 }
  0x2b   :  { %189 = vpow2.f32 %v130_v41 }
  0x34   :  { %v188_v42 = vpop.eup %187 }
  0x35   :  { %v190_v43 = vpop.eup %189  ;;  %v132_v44 = vadd.f32 1.0, %v188_v42  ;;  %v135_v46 = vmul.f32 -0.5, %v188_v42  ;;  %v138_v49 = vand.u32 2147483647, %v188_v42 }
  0x36   :  { %v141_v45 = vadd.f32 1.0, %v190_v43  ;;  %v144_v47 = vmul.f32 -0.5, %v190_v43  ;;  %v147_v52 = vand.u32 2147483647, %v190_v43 }
  0x37   :  { %191 = vlog2.f32 %v132_v44  ;;  %v136_v48 = vadd.f32 1.0, %v135_v46  ;;  %vm139_vm4 = vcmp.lt.f32.partialorder %v138_v49, 0.0004427343 }
  0x38   :  { %193 = vlog2.f32 %v141_v45  ;;  %v145_v50 = vadd.f32 1.0, %v144_v47  ;;  %vm148_vm5 = vcmp.lt.f32.partialorder %v147_v52, 0.0004427343 }
  0x39   :  { %v137_v54 = vmul.f32 %v188_v42, %v136_v48 }
  0x3a   :  { %v146_v56 = vmul.f32 %v190_v43, %v145_v50 }
  0x41   :  { %v192_v55 = vpop.eup %191 }
  0x42   :  { %v194_v58 = vpop.eup %193  ;;  %v134_v59 = vmul.f32 0.6931472, %v192_v55 }
  0x43   :  { %v143_v61 = vmul.f32 0.6931472, %v194_v58 }
  0x44   :  { %v140_v62 = vsel %vm139_vm4, %v137_v54, %v134_v59 }
  0x45   :  { %v149_v63 = vsel %vm148_vm5, %v146_v56, %v143_v61  ;;  %v152_v0 = vsub.f32 %v140_v62, %v150_v57 }
  0x46   :  { %v153_v1 = vsub.f32 %v149_v63, %v151_v60 }
  0x48   :  { %v154_v2 = vadd.f32 %v153_v1, %v152_v0 }
  0x4a   :  { %157 = vst [vmem:[%s227_s2] sm:$0xff] %v154_v2 }

</bundles_post_ra>
